<compile_context>
chip_gen: v5e
topology: v5e:2x2
jax: 0.10.0
libtpu: 0.0.40
codegen_flags: <defaults>
</compile_context>

<pallas_src>
import functools

import jax
import jax.numpy as jnp
from jax.experimental import pallas as pl
from jax.experimental.pallas import tpu as pltpu


def _round_up(x, m):
    return ((x + m - 1) // m) * m


def _cdiv(a, b):
    return -(-a // b)


def _pick_tile(dim, max_tile, align):
    """Tile size for one (non-contraction) dimension.

    If the whole dimension fits in one block, use the exact (possibly
    unaligned) dimension: full-array blocks are exempt from the (8, 128)
    divisibility rule and need no padding.  Otherwise pick the smallest
    aligned tile that covers the dimension in ceil(dim / max_tile) blocks,
    which keeps padding minimal (never close to doubling the work).
    """
    if dim <= max_tile:
        return dim
    n_blocks = _cdiv(dim, max_tile)
    return _round_up(_cdiv(dim, n_blocks), align)


def _equal_linear_kernel(x_ref, w_ref, b_ref, o_ref, *scratch, lr_mul,
                         compute_dtype):
    """One (tm, tn) output tile; K is the innermost (reduction) grid axis.

    x_ref: (tm, tk); w_ref: (tn, tk) in native (out_dim, in_dim) layout;
    b_ref: (1, tn) f32, already scaled by lr_mul; o_ref: (tm, tn).
    When `scratch` is empty, the (float32) output block itself is the
    accumulator (saves one VMEM buffer + an epilogue copy pass).
    """
    acc_ref = scratch[0] if scratch else o_ref
    k = pl.program_id(2)

    @pl.when(k == 0)
    def _init():
        acc_ref[...] = jnp.zeros_like(acc_ref)

    x = x_ref[...]
    w = w_ref[...]
    if compute_dtype is not None:
        x = x.astype(compute_dtype)
        w = w.astype(compute_dtype)
    # Contract the last dim of both operands: x @ w.T on the MXU, f32 acc.
    acc_ref[...] += jax.lax.dot_general(
        x, w, (((1,), (1,)), ((), ())), preferred_element_type=jnp.float32)

    @pl.when(k == pl.num_programs(2) - 1)
    def _finalize():
        acc = acc_ref[...]
        if lr_mul != 1.0:
            acc = acc * jnp.float32(lr_mul)
        o_ref[...] = (acc + b_ref[...]).astype(o_ref.dtype)


def equal_linear(x, weight, bias=None, lr_mul=1.0, *,
                 compute_dtype=jnp.bfloat16, tm=512, tn=512, tk=1024,
                 vmem_limit_bytes=32 * 1024 * 1024):
    """Pallas implementation of EqualLinear.forward.

    x: (..., in_dim); weight: (out_dim, in_dim); bias: (out_dim,) or None.
    compute_dtype: dtype of the MXU operands (None => use the input dtype);
    accumulation is always float32.
    """
    out_dim, in_dim = weight.shape
    batch_shape = x.shape[:-1]
    x2 = x.reshape(-1, in_dim)
    M, K, N = x2.shape[0], in_dim, out_dim
    lr_mul = float(lr_mul)

    # ---- Tile selection: single full block whenever a dim fits in one tile.
    tm_e = _pick_tile(M, tm, 8)
    tn_e = _pick_tile(N, tn, 128)
    # K is the contraction dim: keep its blocks lane-aligned (zero-padded on
    # the host when needed) so the MXU never reduces over undefined lanes.
    if K <= tk:
        tk_e = K if K % 128 == 0 else _round_up(K, 128)
    else:
        tk_e = _round_up(_cdiv(K, _cdiv(K, tk)), 128)

    Mp = _cdiv(M, tm_e) * tm_e
    Np = _cdiv(N, tn_e) * tn_e
    Kp = _cdiv(K, tk_e) * tk_e

    # ---- Host-side prep (all gated; zero extra ops for aligned shapes). ----
    if Mp != M or Kp != K:
        x2 = jnp.pad(x2, ((0, Mp - M), (0, Kp - K)))
    w = weight                                   # native (out_dim, in_dim)
    if Np != N or Kp != K:
        w = jnp.pad(w, ((0, Np - N), (0, Kp - K)))

    if bias is None:
        b = jnp.zeros((N,), dtype=jnp.float32)
    else:
        b = bias.astype(jnp.float32)
    if lr_mul != 1.0:
        b = b * jnp.float32(lr_mul)              # fold lr_mul into bias
    b = b.reshape(1, N)
    if Np != N:
        b = jnp.pad(b, ((0, 0), (0, Np - N)))

    grid = (Mp // tm_e, Np // tn_e, Kp // tk_e)

    out_dtype = x.dtype
    needs_scratch = jnp.dtype(out_dtype) != jnp.dtype(jnp.float32)
    scratch_shapes = ([pltpu.VMEM((tm_e, tn_e), jnp.float32)]
                      if needs_scratch else [])

    kernel = functools.partial(_equal_linear_kernel, lr_mul=lr_mul,
                               compute_dtype=compute_dtype)

    out_p = pl.pallas_call(
        kernel,
        out_shape=jax.ShapeDtypeStruct((Mp, Np), out_dtype),
        grid_spec=pltpu.PrefetchScalarGridSpec(
            num_scalar_prefetch=0,
            grid=grid,
            in_specs=[
                pl.BlockSpec((tm_e, tk_e), lambda i, j, k: (i, k)),  # x
                pl.BlockSpec((tn_e, tk_e), lambda i, j, k: (j, k)),  # weight
                pl.BlockSpec((1, tn_e), lambda i, j, k: (0, j)),     # bias
            ],
            out_specs=pl.BlockSpec((tm_e, tn_e), lambda i, j, k: (i, j)),
            scratch_shapes=scratch_shapes,
        ),
        compiler_params=pltpu.CompilerParams(
            dimension_semantics=("parallel", "parallel", "arbitrary"),
            vmem_limit_bytes=vmem_limit_bytes,
        ),
    )(x2, w, b)

    out = out_p
    if Mp != M or Np != N:
        out = out[:M, :N]
    return out.reshape(*batch_shape, N)


if __name__ == "__main__":
    key = jax.random.PRNGKey(0)
    ks = jax.random.split(key, 12)

    def ref(x, w, b, lr):
        return (x @ w.T) * lr + b * lr

    def bf16r(a):                      # round to bf16, keep as f32
        return a.astype(jnp.bfloat16).astype(jnp.float32)

    # --- 1. Small shapes, explicit f32 compute path (single block, no pads
    #        except the K lane pad 32->128).  Inputs are bf16-exact so the
    #        comparison is robust to MXU operand handling. ------------------
    x1 = bf16r(jax.random.normal(ks[0], (2, 8, 32), dtype=jnp.float32))
    w1 = bf16r(jax.random.normal(ks[1], (64, 32), dtype=jnp.float32))
    b1 = bf16r(jax.random.normal(ks[2], (64,), dtype=jnp.float32))
    o1 = jax.block_until_ready(
        equal_linear(x1, w1, b1, lr_mul=0.5, compute_dtype=jnp.float32))
    r1 = ref(x1.reshape(-1, 32), w1, b1, 0.5).reshape(2, 8, 64)
    assert o1.shape == (2, 8, 64) and o1.dtype == x1.dtype
    assert jnp.allclose(o1, r1, rtol=1e-3, atol=1e-3), "test1 mismatch"

    # --- 2. Mapping-network style shape: whole 512x512 weight resident in
    #        VMEM, grid=(1,1,1), no padding/transpose, default bf16 MXU path.
    #        Reference uses the same bf16-rounded operands. -----------------
    x2 = jax.random.normal(ks[3], (8, 512), dtype=jnp.float32)
    w2 = jax.random.normal(ks[4], (512, 512), dtype=jnp.float32)
    b2 = jax.random.normal(ks[5], (512,), dtype=jnp.float32)
    o2 = jax.block_until_ready(equal_linear(x2, w2, b2, lr_mul=0.1))
    r2 = ref(bf16r(x2), bf16r(w2), b2, 0.1)
    assert o2.shape == (8, 512)
    assert jnp.allclose(o2, r2, rtol=1e-2, atol=1e-2), "test2 mismatch"

    # --- 3. Multi-tile grid (M, N, K all tiled; K reduction over 2 steps,
    #        f32 accumulation directly in the output block). ----------------
    x3 = jax.random.normal(ks[6], (1024, 1536), dtype=jnp.float32)
    w3 = jax.random.normal(ks[7], (768, 1536), dtype=jnp.float32)
    b3 = jax.random.normal(ks[8], (768,), dtype=jnp.float32)
    o3 = jax.block_until_ready(equal_linear(x3, w3, b3, lr_mul=1.0))
    r3 = ref(bf16r(x3), bf16r(w3), b3, 1.0)
    assert o3.shape == (1024, 768)
    assert jnp.allclose(o3, r3, rtol=1e-2, atol=1e-2), "test3 mismatch"

    # --- 4. bf16 inputs / bf16 output (exercises the f32 scratch accum). ----
    x4 = jax.random.normal(ks[9], (4, 8, 256), dtype=jnp.float32).astype(jnp.bfloat16)
    w4 = jax.random.normal(ks[10], (128, 256), dtype=jnp.float32).astype(jnp.bfloat16)
    b4 = jax.random.normal(ks[11], (128,), dtype=jnp.float32).astype(jnp.bfloat16)
    o4 = jax.block_until_ready(equal_linear(x4, w4, b4, lr_mul=1.0))
    r4 = ref(x4.astype(jnp.float32).reshape(-1, 256),
             w4.astype(jnp.float32), b4.astype(jnp.float32),
             1.0).reshape(4, 8, 128)
    assert o4.shape == (4, 8, 128) and o4.dtype == jnp.bfloat16
    assert jnp.allclose(o4.astype(jnp.float32), r4, rtol=2e-2, atol=2e-2), \
        "test4 mismatch"

    print("KERNEL_OK")
</pallas_src>

<mosaic_0001>
module attributes {stable_mosaic.version = 11 : i64} {
  func.func @_equal_linear_kernel(%arg0: i32, %arg1: i32, %arg2: i32, %arg3: memref<16x128xf32, #tpu.memory_space<vmem>>, %arg4: memref<64x128xf32, #tpu.memory_space<vmem>>, %arg5: memref<1x64xf32, #tpu.memory_space<vmem>>, %arg6: memref<16x64xf32, #tpu.memory_space<vmem>>) attributes {dimension_semantics = [#tpu.dimension_semantics<parallel>, #tpu.dimension_semantics<parallel>, #tpu.dimension_semantics<arbitrary>], iteration_bounds = array<i64: 1, 1, 1>, scalar_prefetch = 0 : i64, scratch_operands = 0 : i64, tpu.core_type = #tpu.core_type<tc>, window_params = [{transform_indices = @transform_0, window_bounds = array<i64: 16, 128>}, {transform_indices = @transform_1, window_bounds = array<i64: 64, 128>}, {transform_indices = @transform_2, window_bounds = array<i64: 1, 64>}, {transform_indices = @transform_3, window_bounds = array<i64: 16, 64>}]} {
    %c0_i32 = arith.constant 0 : i32
    %0 = arith.cmpi eq, %arg2, %c0_i32 : i32
    %1 = arith.extui %0 : i1 to i32
    %c0_i32_0 = arith.constant 0 : i32
    %2 = arith.cmpi ne, %1, %c0_i32_0 : i32
    scf.if %2 {
      %cst_10 = arith.constant 0.000000e+00 : f32
      %12 = vector.broadcast %cst_10 : f32 to vector<16x64xf32>
      %c0_11 = arith.constant 0 : index
      %c0_12 = arith.constant 0 : index
      %13 = vector.load %arg6[%c0_11, %c0_12] : memref<16x64xf32, #tpu.memory_space<vmem>>, vector<16x64xf32>
      tpu.vector_store %arg6[%c0_11, %c0_12], %12 {strides = array<i32>} : memref<16x64xf32, #tpu.memory_space<vmem>>, vector<16x64xf32>,
    } else {
    }
    %c0 = arith.constant 0 : index
    %c0_1 = arith.constant 0 : index
    %3 = vector.load %arg3[%c0, %c0_1] : memref<16x128xf32, #tpu.memory_space<vmem>>, vector<16x128xf32>
    %c0_2 = arith.constant 0 : index
    %c0_3 = arith.constant 0 : index
    %4 = vector.load %arg4[%c0_2, %c0_3] : memref<64x128xf32, #tpu.memory_space<vmem>>, vector<64x128xf32>
    %c0_4 = arith.constant 0 : index
    %c0_5 = arith.constant 0 : index
    %5 = vector.load %arg6[%c0_4, %c0_5] : memref<16x64xf32, #tpu.memory_space<vmem>>, vector<16x64xf32>
    %cst = arith.constant dense<0.000000e+00> : vector<16x64xf32>
    %6 = tpu.matmul %3, %4, %cst {dimension_numbers = #tpu.dot_dimension_numbers<[1], [1], [0], [0], [0, 0, 1, 0], [], []>} : vector<16x128xf32>, vector<64x128xf32>, vector<16x64xf32> -> vector<16x64xf32>
    %7 = arith.addf %5, %6 : vector<16x64xf32>
    %c0_6 = arith.constant 0 : index
    %c0_7 = arith.constant 0 : index
    %8 = vector.load %arg6[%c0_6, %c0_7] : memref<16x64xf32, #tpu.memory_space<vmem>>, vector<16x64xf32>
    tpu.vector_store %arg6[%c0_6, %c0_7], %7 {strides = array<i32>} : memref<16x64xf32, #tpu.memory_space<vmem>>, vector<16x64xf32>,
    %c0_i32_8 = arith.constant 0 : i32
    %9 = arith.cmpi eq, %arg2, %c0_i32_8 : i32
    %10 = arith.extui %9 : i1 to i32
    %c0_i32_9 = arith.constant 0 : i32
    %11 = arith.cmpi ne, %10, %c0_i32_9 : i32
    scf.if %11 {
      %c0_10 = arith.constant 0 : index
      %c0_11 = arith.constant 0 : index
      %12 = vector.load %arg6[%c0_10, %c0_11] : memref<16x64xf32, #tpu.memory_space<vmem>>, vector<16x64xf32>
      %cst_12 = arith.constant 5.000000e-01 : f32
      %13 = vector.broadcast %cst_12 : f32 to vector<16x64xf32>
      %14 = arith.mulf %12, %13 : vector<16x64xf32>
      %c0_13 = arith.constant 0 : index
      %c0_14 = arith.constant 0 : index
      %15 = vector.load %arg5[%c0_13, %c0_14] : memref<1x64xf32, #tpu.memory_space<vmem>>, vector<1x64xf32>
      %16 = vector.broadcast %15 : vector<1x64xf32> to vector<16x64xf32>
      %17 = arith.addf %14, %16 : vector<16x64xf32>
      %c0_15 = arith.constant 0 : index
      %c0_16 = arith.constant 0 : index
      %18 = vector.load %arg6[%c0_15, %c0_16] : memref<16x64xf32, #tpu.memory_space<vmem>>, vector<16x64xf32>
      tpu.vector_store %arg6[%c0_15, %c0_16], %17 {strides = array<i32>} : memref<16x64xf32, #tpu.memory_space<vmem>>, vector<16x64xf32>,
    } else {
    }
    return
  }
  func.func @transform_0(%arg0: i32, %arg1: i32, %arg2: i32) -> (i32, i32) {
    %c0_i32 = arith.constant 0 : i32
    return %arg0, %arg2 : i32, i32
  }
  func.func @transform_1(%arg0: i32, %arg1: i32, %arg2: i32) -> (i32, i32) {
    %c0_i32 = arith.constant 0 : i32
    return %arg1, %arg2 : i32, i32
  }
  func.func @transform_2(%arg0: i32, %arg1: i32, %arg2: i32) -> (i32, i32) {
    %c0_i32 = arith.constant 0 : i32
    %c0_i32_0 = arith.constant 0 : i32
    return %c0_i32, %arg1 : i32, i32
  }
  func.func @transform_3(%arg0: i32, %arg1: i32, %arg2: i32) -> (i32, i32) {
    %c0_i32 = arith.constant 0 : i32
    return %arg0, %arg1 : i32, i32
  }
}

</mosaic_0001>

<bundles_post_ra>
// kernel: tpu_custom_call.1
= control target key start
LH: loop header
LB: loop body
LE: loop exit
PB: predicated region body
PF: predicated region fallthrough
CT: control target
= control target key end

     0   :  { %8 = vsyncpa [#allocation3], 0  ;;  %s275_s0 = inlined_call_operand.hbm [shape: f32[16,128], index: 0, kind: input, shape index: {}]   ;;  %s276_s1 = inlined_call_operand.hbm [shape: f32[64,128], index: 1, kind: input, shape index: {}]   ;;  %s277_s2 = inlined_call_operand.vmem [shape: f32[1,64], index: 2, kind: input, shape index: {}]   ;;  %s278_s3 = inlined_call_operand.hbm [shape: f32[16,64], index: 3, kind: output, shape index: {}]  }
   0x1   :  { %9 = vsyncpa [#allocation6], 0 }
   0x2   :  { %10 = vsyncpa [#allocation4], 0  ;;  %s15_s14 = sshll.u32 %s275_s0, 4  ;;  %s222_s15 = smov [#allocation2]   ;;  %s16_s14 = int_to_ptr.hbm [resolvable:$true] %s15_s14 }
   0x3   :  { %s17_s16 = sshll.u32 %s222_s15, 4  ;;  %s28_s19 = sshll.u32 %s276_s1, 4  ;;  %s18_s16 = int_to_ptr.vmem [resolvable:$true] %s17_s16  ;;  %s29_s19 = int_to_ptr.hbm [resolvable:$true] %s28_s19 }
   0x4   :  { %s223_s20 = smov 128   ;;  %s224_s21 = smov 8  }
   0x5   :  { %23 = dma.hbm_to_vmem [thread:$0]  %s16_s14, 256, %s18_s16, [#allocation3], %s223_s20, %s223_s20, %s224_s21  }
   0x6   :  { %s225_s22 = smov [#allocation5]  }
   0x7   :  { %s30_s23 = sshll.u32 %s225_s22, 4  ;;  %s31_s23 = int_to_ptr.vmem [resolvable:$true] %s30_s23 }
   0x8   :  { %36 = dma.hbm_to_vmem [thread:$0]  %s29_s19, 1024, %s31_s23, [#allocation6], %s223_s20, %s223_s20, %s224_s21  }
   0x9   :  { %216 = dma.done.wait [#allocation3], 256  }
   0xa   :  { %217 = vsyncadd [#allocation3], 4294967040 }
   0xb   :  { %218 = dma.done.wait [#allocation6], 1024  }
   0xc   :  { %219 = vsyncadd [#allocation6], 4294966272  ;;  %v63_v0 = vld [vmem:[#allocation5 + $0x38] sm:$0xff]  ;;  %vm51_vm0 = vcmask 523264   ;;  %v226_v1 = vmov 0.0   ;;  %v62_v2 = vld [vmem:[#allocation5 + $0x30] sm:$0xff] }
   0xd   :  { %74 = vmatpush.xpose.msra.mxu0 %v63_v0  ;;  %129 = vmatpush.xpose.msra.mxu1 %v63_v0  ;;  %52 = vst.msk [vmem:[#allocation7] sm:$0xff] %vm51_vm0, %v226_v1  ;;  %v61_v3 = vld [vmem:[#allocation5 + $0x28] sm:$0xff]  ;;  %v60_v4 = vld [vmem:[#allocation5 + $0x20] sm:$0xff]  ;;  %v59_v5 = vld [vmem:[#allocation5 + $0x18] sm:$0xff]  ;;  %s227_s24 = smov [#allocation7]   ;;  %s115_s28 = sshll.u32 %s278_s3, 4  ;;  %s116_s28 = int_to_ptr.hbm [resolvable:$true] %s115_s28 }
   0xe   :  { %53 = vst.msk [vmem:[#allocation7 + $0x8] sm:$0xff] %vm51_vm0, %v226_v1  ;;  %v58_v6 = vld [vmem:[#allocation5 + $0x10] sm:$0xff]  ;;  %v57_v7 = vld [vmem:[#allocation5 + $0x8] sm:$0xff]  ;;  %v56_v8 = vld [vmem:[#allocation5] sm:$0xff]  ;;  %s113_s25 = sshll.u32 %s227_s24, 4  ;;  %s114_s25 = int_to_ptr.vmem [resolvable:$true] %s113_s25 }
   0xf   :  { %v54_v9 = vld [vmem:[#allocation2] sm:$0xff]  ;;  %v55_v10 = vld [vmem:[#allocation2 + $0x8] sm:$0xff] }
  0x10   :  { %v143_v17 = vld [vmem:[%s277_s2] ss:$0 sm:$0xff] }
  0x11   :  { %75 = vmatpush.xpose.msra.mxu0 %v62_v2  ;;  %130 = vmatpush.xpose.msra.mxu1 %v62_v2 }
  0x14   :  { %v64_v11 = vld [vmem:[#allocation7] sm:$0xff] }
  0x15   :  { %76 = vmatpush.xpose.msra.mxu0 %v61_v3  ;;  %131 = vmatpush.xpose.msra.mxu1 %v61_v3  ;;  %v65_v12 = vld [vmem:[#allocation7 + $0x8] sm:$0xff] }
  0x19   :  { %77 = vmatpush.xpose.msra.mxu0 %v60_v4  ;;  %132 = vmatpush.xpose.msra.mxu1 %v60_v4 }
  0x1d   :  { %78 = vmatpush.xpose.msra.mxu0 %v59_v5  ;;  %133 = vmatpush.xpose.msra.mxu1 %v59_v5 }
  0x21   :  { %79 = vmatpush.xpose.msra.mxu0 %v58_v6  ;;  %134 = vmatpush.xpose.msra.mxu1 %v58_v6 }
  0x25   :  { %80 = vmatpush.xpose.msra.mxu0 %v57_v7  ;;  %135 = vmatpush.xpose.msra.mxu1 %v57_v7 }
  0x29   :  { %81 = vmatpush.xpose.msra.mxu0 %v56_v8  ;;  %136 = vmatpush.xpose.msra.mxu1 %v56_v8 }
  0x2c   :  { %82 = vmatmul.f32.vlgmr.msra.gmra.mxu0 %v54_v9  ;;  %85 = vmatmul.f32.vlgmr.msra.gmra.mxu1 %v55_v10 }
  0xa9   :  { %v83_v13 = vpop.f32.mrf.mxu0  ;;  %v86_v14 = vpop.f32.mrf.mxu1 }
  0xaa   :  { %v89_v15 = vadd.f32 %v83_v13, %v64_v11  ;;  %v90_v16 = vadd.f32 %v86_v14, %v65_v12 }
  0xac   :  { %92 = vst.msk [vmem:[#allocation7] sm:$0xff] %vm51_vm0, %v89_v15 }
  0xad   :  { %93 = vst.msk [vmem:[#allocation7 + $0x8] sm:$0xff] %vm51_vm0, %v90_v16 }
  0xb3   :  { %v97_v18 = vld [vmem:[#allocation7] sm:$0xff] }
  0xb4   :  { %v98_v19 = vld [vmem:[#allocation7 + $0x8] sm:$0xff]  ;;  %v99_v20 = vmul.f32 0.5, %v97_v18 }
  0xb5   :  { %v100_v21 = vmul.f32 0.5, %v98_v19 }
  0xb6   :  { %v105_v22 = vadd.f32 %v143_v17, %v99_v20 }
  0xb7   :  { %v106_v23 = vadd.f32 %v143_v17, %v100_v21 }
  0xb8   :  { %107 = vst.msk [vmem:[#allocation7] sm:$0xff] %vm51_vm0, %v105_v22 }
  0xb9   :  { %108 = vst.msk [vmem:[#allocation7 + $0x8] sm:$0xff] %vm51_vm0, %v106_v23 }
  0xba   :  { %121 = dma.vmem_to_hbm [thread:$0]  %s114_s25, 256, %s116_s28, [#allocation4], %s223_s20, %s223_s20, %s224_s21  }
  0xbb   :  { %220 = dma.done.wait [#allocation4], 256  }
  0xbc   :  { %221 = vsyncadd [#allocation4], 4294967040 }
  0xbd   :  { %126 = vsyncpa [#allocation3], 1 }
  0xbe   :  { %127 = vsyncpa [#allocation6], 1 }
  0xbf   :  { %128 = vsyncpa [#allocation4], 1 }

</bundles_post_ra>
